<compile_context>
chip_gen: v5e
topology: v5e:2x2
jax: 0.10.0
libtpu: 0.0.40
codegen_flags: <defaults>
</compile_context>

<pallas_src>
import functools

import jax
import jax.numpy as jnp
from jax.experimental import pallas as pl
from jax.experimental.pallas import tpu as pltpu

# --- synthetic tcnn "Network" hyperparameters -------------------------------
N_INPUT_DIMS = 16        # self.n_input_dims
N_OUTPUT_DIMS = 7        # self.n_output_dims (sliced from the padded output)
HIDDEN = 64              # fully-fused MLP hidden width
PADDED_OUTPUT = 16       # tcnn pads output width up to a multiple of 16
SEED = 1337              # NoGradModule default seed for initial_params

FOLD = 8                 # batch rows folded into one 128-lane I/O row
IN_LANES = FOLD * N_INPUT_DIMS      # 128
HID_LANES = FOLD * HIDDEN           # 512
OUT_LANES = FOLD * PADDED_OUTPUT    # 128

MAX_TILE_BF = 1024       # max folded rows per grid step (= 8192 batch rows)

# TODO(synk): the CUDA-device check/warning and the native tcnn param blob /
# loss_scale (backward-only) have no TPU/Pallas equivalent and are omitted.


def _round_up(n, m):
    return (n + m - 1) // m * m


def _device_kind():
    try:
        return jax.devices()[0].device_kind.lower()
    except Exception:
        return ""


def _mxu_dim():
    """MXU systolic array size: 128 on v2-v5, 256 on v6e/v7x."""
    kind = _device_kind()
    for tag in ("v2", "v3", "v4", "v5"):
        if tag in kind:
            return 128
    return 256


def _num_tensorcores():
    """TensorCores per chip (megacore): 2 on v4/v5p/v7x, else 1."""
    kind = _device_kind()
    if ("v4" in kind) or ("v5p" in kind) or ("v7" in kind):
        return 2
    return 1


MXU_DIM = _mxu_dim()
# Per-generation fold for the square layer-1 weight block (review item):
# 4 on v6e/v7x (256x256 MXU), 2 on v5e/v5p/v4 (128x128 MXU).
SUBFOLD = max(1, min(FOLD, MXU_DIM // HIDDEN))
SUB_LANES = SUBFOLD * HIDDEN        # 256 (v6e/v7x) / 128 (v5e)
N_SLICES = FOLD // SUBFOLD          # 2 / 4
TARGET_BLOCKS = 2 * _num_tensorcores()   # >=2 so both TCs get work on v7x


@functools.lru_cache(maxsize=None)
def _kernel_out_dtype():
    """float16 if Mosaic supports f16 stores on this target (preferred: no
    epilogue re-cast and no bf16->f16 double rounding); bf16 fallback."""
    def probe(x_ref, o_ref):
        o_ref[...] = x_ref[...].astype(jnp.float16)
    try:
        out = pl.pallas_call(
            probe, out_shape=jax.ShapeDtypeStruct((8, 128), jnp.float16)
        )(jnp.zeros((8, 128), jnp.float32))
        jax.block_until_ready(out)
        return jnp.float16
    except Exception:
        return jnp.bfloat16


def mlp_fold_kernel(x_ref, w0_ref, w1_ref, w2_ref, o_ref):
    """Fused 3-layer MLP on one folded batch tile.

    x_ref : (tile_bf, 128)             input dtype (cast to bf16 here)
    w0_ref: (128, 512)                 kron(I_8, W0), bf16, VMEM-resident
    w1_ref: (SUB_LANES, SUB_LANES)     kron(I_SUBFOLD, W1), bf16
    w2_ref: (512, 128)                 kron(I_8, W2), bf16
    o_ref : (tile_bf, 128)             f16 (or bf16 fallback), unmasked stores
    """
    x = x_ref[...].astype(jnp.bfloat16)
    h = jnp.dot(x, w0_ref[...], preferred_element_type=jnp.float32)
    h = jnp.maximum(h, 0.0).astype(jnp.bfloat16)

    # Layer 1 on MXU-sized, lane-register-aligned slices of the hidden
    # activation: each slice is one weight pass on this generation's MXU and
    # the math is exactly the FOLD=8 block-diagonal matmul (off-diagonal
    # blocks are zero).  Static Python loop -> unrolled, 2 (v6e/v7x) or
    # 4 (v5e) matmuls.
    w1 = w1_ref[...]
    parts = [
        jnp.dot(h[:, s * SUB_LANES:(s + 1) * SUB_LANES], w1,
                preferred_element_type=jnp.float32)
        for s in range(N_SLICES)
    ]
    h2 = jnp.concatenate(parts, axis=-1) if N_SLICES > 1 else parts[0]
    h2 = jnp.maximum(h2, 0.0).astype(jnp.bfloat16)

    y = jnp.dot(h2, w2_ref[...], preferred_element_type=jnp.float32)
    o_ref[...] = y.astype(o_ref.dtype)


def prepare_block_weights(w0, w1, w2):
    """One-time conversion: fp16 params -> bf16 block-diagonal weights.

    kron(I_n, W) keeps every folded sub-row independent, so the folded matmul
    is exactly the original per-row MLP.  W1 only needs SUBFOLD-sized blocks
    (the kernel applies it to lane-aligned slices), which keeps its K and N
    dims <= the MXU size -> one weight pass per slice.
    """
    def bd(w, n):
        wf = w.astype(jnp.float32)
        return jnp.kron(jnp.eye(n, dtype=jnp.float32), wf).astype(jnp.bfloat16)
    # shapes: (128, 512), (SUB_LANES, SUB_LANES), (512, 128)
    return bd(w0, FOLD), bd(w1, SUBFOLD), bd(w2, FOLD)


def no_grad_module_forward(x, w0b, w1b, w2b):
    """Reproduces NoGradModule.forward semantics on TPU.

    x   : [batch, N_INPUT_DIMS], any float dtype.  Passing bf16 halves input
          HBM traffic; the kernel casts to bf16 internally either way (do NOT
          add a wrapper-side cast pass).
    w*b : bf16 block-diagonal weights from prepare_block_weights().
    returns [batch, N_OUTPUT_DIMS] float16 (tcnn output dtype == param precision).
    """
    batch = x.shape[0]

    # The original module pads the batch to _C.batch_size_granularity(); the
    # only analogous requirement here is batch % FOLD == 0 so the fold below
    # is a free row-major reshape.  The pad (a full copy, exactly like F.pad
    # in the original) is elided whenever callers keep the batch 8-row aligned.
    padf = (-batch) % FOLD
    xp = jnp.pad(x, ((0, padf), (0, 0))) if padf else x
    fold_rows = (batch + padf) // FOLD
    x_fold = xp.reshape(fold_rows, IN_LANES)            # free row-major reshape

    # Big tiles to amortize the ~0.35us/step overhead, but at least
    # TARGET_BLOCKS grid steps so 2-TC chips (v7x) shard the batch axis and
    # the next tile's input DMA overlaps compute.
    tile_bf = min(MAX_TILE_BF,
                  _round_up(pl.cdiv(fold_rows, TARGET_BLOCKS), 8))
    grid = (pl.cdiv(fold_rows, tile_bf),)               # edge block is masked

    out_dtype = _kernel_out_dtype()
    out_fold = pl.pallas_call(
        mlp_fold_kernel,
        out_shape=jax.ShapeDtypeStruct((fold_rows, OUT_LANES), out_dtype),
        grid_spec=pltpu.PrefetchScalarGridSpec(
            num_scalar_prefetch=0,
            grid=grid,
            in_specs=[
                pl.BlockSpec((tile_bf, IN_LANES), lambda i: (i, 0)),
                # Constant index_map -> weights are fetched once and stay
                # resident in VMEM across all grid steps (~0.4 MiB total).
                # TODO(synk): pipeline_mode=pl.Buffered(1) would drop the
                # unused second weight buffer; skipped for portability.
                pl.BlockSpec(w0b.shape, lambda i: (0, 0)),
                pl.BlockSpec(w1b.shape, lambda i: (0, 0)),
                pl.BlockSpec(w2b.shape, lambda i: (0, 0)),
            ],
            out_specs=pl.BlockSpec((tile_bf, OUT_LANES), lambda i: (i, 0)),
        ),
        compiler_params=pltpu.CompilerParams(
            dimension_semantics=("parallel",),
            vmem_limit_bytes=32 * 1024 * 1024,
        ),
    )(x_fold, w0b, w1b, w2b)

    # Free unfold reshape, then the spec-mandated [:batch, :n_output_dims]
    # slice.  With an f16 kernel output the astype below is a no-op; callers
    # that can consume the padded 16-wide output should skip the slice.
    out = out_fold.reshape(fold_rows * FOLD, PADDED_OUTPUT)
    return out[:batch, :N_OUTPUT_DIMS].astype(jnp.float16)


def init_params(seed=SEED):
    """Deterministic synthetic stand-in for native_tcnn_module.initial_params(seed)."""
    key = jax.random.PRNGKey(seed)
    k0, k1, k2 = jax.random.split(key, 3)
    w0 = jax.random.uniform(k0, (N_INPUT_DIMS, HIDDEN), jnp.float32,
                            minval=-0.25, maxval=0.25).astype(jnp.float16)
    w1 = jax.random.uniform(k1, (HIDDEN, HIDDEN), jnp.float32,
                            minval=-0.125, maxval=0.125).astype(jnp.float16)
    w2 = jax.random.uniform(k2, (HIDDEN, PADDED_OUTPUT), jnp.float32,
                            minval=-0.125, maxval=0.125).astype(jnp.float16)
    return w0, w1, w2


def ref_forward(x, w0, w1, w2):
    """Plain-JAX reference mirroring the kernel's bf16 operand rounding."""
    f32 = jnp.float32
    xb = x.astype(jnp.bfloat16).astype(f32)
    a = w0.astype(jnp.bfloat16).astype(f32)
    b = w1.astype(jnp.bfloat16).astype(f32)
    c = w2.astype(jnp.bfloat16).astype(f32)
    h = jnp.maximum(xb @ a, 0.0).astype(jnp.bfloat16).astype(f32)
    h = jnp.maximum(h @ b, 0.0).astype(jnp.bfloat16).astype(f32)
    y = h @ c
    return y[:, :N_OUTPUT_DIMS].astype(jnp.float16)


if __name__ == "__main__":
    w0, w1, w2 = init_params(SEED)
    w0b, w1b, w2b = prepare_block_weights(w0, w1, w2)

    # small batch (8) — single folded tile
    x = jax.random.normal(jax.random.PRNGKey(0), (8, N_INPUT_DIMS),
                          dtype=jnp.float32)
    out = no_grad_module_forward(x, w0b, w1b, w2b)
    jax.block_until_ready(out)
    assert out.shape == (8, N_OUTPUT_DIMS), out.shape
    assert out.dtype == jnp.float16, out.dtype
    ref = ref_forward(x, w0, w1, w2)
    assert jnp.allclose(out.astype(jnp.float32), ref.astype(jnp.float32),
                        atol=2e-2, rtol=2e-2)

    # batch not a multiple of 8 — exercises the pad-to-8 path, a >1 grid and
    # the masked partial edge block
    x2 = jax.random.normal(jax.random.PRNGKey(1), (203, N_INPUT_DIMS),
                           dtype=jnp.float32)
    out2 = no_grad_module_forward(x2, w0b, w1b, w2b)
    jax.block_until_ready(out2)
    assert out2.shape == (203, N_OUTPUT_DIMS), out2.shape
    ref2 = ref_forward(x2, w0, w1, w2)
    assert jnp.allclose(out2.astype(jnp.float32), ref2.astype(jnp.float32),
                        atol=2e-2, rtol=2e-2)

    print("KERNEL_OK")
</pallas_src>

<mosaic_0001>
module attributes {stable_mosaic.version = 11 : i64} {
  func.func @probe(%arg0: memref<8x128xf32, #tpu.memory_space<vmem>>, %arg1: memref<8x128xf16, #tpu.memory_space<vmem>>) attributes {dimension_semantics = [], scalar_prefetch = 0 : i64, scratch_operands = 0 : i64, tpu.core_type = #tpu.core_type<tc>} {
    %c0 = arith.constant 0 : index
    %c0_0 = arith.constant 0 : index
    %0 = vector.load %arg0[%c0, %c0_0] : memref<8x128xf32, #tpu.memory_space<vmem>>, vector<8x128xf32>
    %1 = arith.truncf %0 : vector<8x128xf32> to vector<8x128xf16>
    %c0_1 = arith.constant 0 : index
    %c0_2 = arith.constant 0 : index
    %2 = vector.load %arg1[%c0_1, %c0_2] : memref<8x128xf16, #tpu.memory_space<vmem>>, vector<8x128xf16>
    tpu.vector_store %arg1[%c0_1, %c0_2], %1 {strides = array<i32>} : memref<8x128xf16, #tpu.memory_space<vmem>>, vector<8x128xf16>,
    return
  }
}

module attributes {stable_mosaic.version = 11 : i64} {
  func.func @mlp_fold_kernel(%arg0: i32, %arg1: memref<8x128xf32, #tpu.memory_space<vmem>>, %arg2: memref<128x512xbf16, #tpu.memory_space<vmem>>, %arg3: memref<256x256xbf16, #tpu.memory_space<vmem>>, %arg4: memref<512x128xbf16, #tpu.memory_space<vmem>>, %arg5: memref<8x128xbf16, #tpu.memory_space<vmem>>) attributes {dimension_semantics = [#tpu.dimension_semantics<parallel>], iteration_bounds = array<i64: 1>, scalar_prefetch = 0 : i64, scratch_operands = 0 : i64, tpu.core_type = #tpu.core_type<tc>, window_params = [{transform_indices = @transform_0, window_bounds = array<i64: 8, 128>}, {pipeline_mode = #tpu.pipeline_mode<synchronous>, transform_indices = @transform_1, window_bounds = array<i64: 128, 512>}, {pipeline_mode = #tpu.pipeline_mode<synchronous>, transform_indices = @transform_2, window_bounds = array<i64: 256, 256>}, {pipeline_mode = #tpu.pipeline_mode<synchronous>, transform_indices = @transform_3, window_bounds = array<i64: 512, 128>}, {transform_indices = @transform_4, window_bounds = array<i64: 8, 128>}]} {
    %c0 = arith.constant 0 : index
    %c0_0 = arith.constant 0 : index
    %0 = vector.load %arg1[%c0, %c0_0] : memref<8x128xf32, #tpu.memory_space<vmem>>, vector<8x128xf32>
    %1 = arith.truncf %0 : vector<8x128xf32> to vector<8x128xbf16>
    %c0_1 = arith.constant 0 : index
    %c0_2 = arith.constant 0 : index
    %2 = vector.load %arg2[%c0_1, %c0_2] : memref<128x512xbf16, #tpu.memory_space<vmem>>, vector<128x512xbf16>
    %cst = arith.constant dense<0.000000e+00> : vector<8x512xf32>
    %3 = tpu.matmul %1, %2, %cst {dimension_numbers = #tpu.dot_dimension_numbers<[1], [0], [0], [1], [0, 0, 1, 1], [], []>} : vector<8x128xbf16>, vector<128x512xbf16>, vector<8x512xf32> -> vector<8x512xf32>
    %cst_3 = arith.constant 0.000000e+00 : f32
    %4 = vector.broadcast %cst_3 : f32 to vector<8x512xf32>
    %5 = arith.maximumf %3, %4 : vector<8x512xf32>
    %6 = arith.truncf %5 : vector<8x512xf32> to vector<8x512xbf16>
    %c0_4 = arith.constant 0 : index
    %c0_5 = arith.constant 0 : index
    %7 = vector.load %arg3[%c0_4, %c0_5] : memref<256x256xbf16, #tpu.memory_space<vmem>>, vector<256x256xbf16>
    %8 = vector.extract_strided_slice %6 {offsets = [0, 0], sizes = [8, 256], strides = [1, 1]} : vector<8x512xbf16> to vector<8x256xbf16>
    %cst_6 = arith.constant dense<0.000000e+00> : vector<8x256xf32>
    %9 = tpu.matmul %8, %7, %cst_6 {dimension_numbers = #tpu.dot_dimension_numbers<[1], [0], [0], [1], [0, 0, 1, 1], [], []>} : vector<8x256xbf16>, vector<256x256xbf16>, vector<8x256xf32> -> vector<8x256xf32>
    %10 = vector.extract_strided_slice %6 {offsets = [0, 256], sizes = [8, 256], strides = [1, 1]} : vector<8x512xbf16> to vector<8x256xbf16>
    %cst_7 = arith.constant dense<0.000000e+00> : vector<8x256xf32>
    %11 = tpu.matmul %10, %7, %cst_7 {dimension_numbers = #tpu.dot_dimension_numbers<[1], [0], [0], [1], [0, 0, 1, 1], [], []>} : vector<8x256xbf16>, vector<256x256xbf16>, vector<8x256xf32> -> vector<8x256xf32>
    %12 = tpu.concatenate %9, %11 in 1 : vector<8x256xf32>, vector<8x256xf32> -> vector<8x512xf32>
    %cst_8 = arith.constant 0.000000e+00 : f32
    %13 = vector.broadcast %cst_8 : f32 to vector<8x512xf32>
    %14 = arith.maximumf %12, %13 : vector<8x512xf32>
    %15 = arith.truncf %14 : vector<8x512xf32> to vector<8x512xbf16>
    %c0_9 = arith.constant 0 : index
    %c0_10 = arith.constant 0 : index
    %16 = vector.load %arg4[%c0_9, %c0_10] : memref<512x128xbf16, #tpu.memory_space<vmem>>, vector<512x128xbf16>
    %cst_11 = arith.constant dense<0.000000e+00> : vector<8x128xf32>
    %17 = tpu.matmul %15, %16, %cst_11 {dimension_numbers = #tpu.dot_dimension_numbers<[1], [0], [0], [1], [0, 0, 1, 1], [], []>} : vector<8x512xbf16>, vector<512x128xbf16>, vector<8x128xf32> -> vector<8x128xf32>
    %18 = arith.truncf %17 : vector<8x128xf32> to vector<8x128xbf16>
    %c0_12 = arith.constant 0 : index
    %c0_13 = arith.constant 0 : index
    %19 = vector.load %arg5[%c0_12, %c0_13] : memref<8x128xbf16, #tpu.memory_space<vmem>>, vector<8x128xbf16>
    tpu.vector_store %arg5[%c0_12, %c0_13], %18 {strides = array<i32>} : memref<8x128xbf16, #tpu.memory_space<vmem>>, vector<8x128xbf16>,
    return
  }
  func.func @transform_0(%arg0: i32) -> (i32, i32) {
    %c0_i32 = arith.constant 0 : i32
    %c0_i32_0 = arith.constant 0 : i32
    return %arg0, %c0_i32 : i32, i32
  }
  func.func @transform_1(%arg0: i32) -> (i32, i32) {
    %c0_i32 = arith.constant 0 : i32
    %c0_i32_0 = arith.constant 0 : i32
    %c0_i32_1 = arith.constant 0 : i32
    return %c0_i32, %c0_i32_0 : i32, i32
  }
  func.func @transform_2(%arg0: i32) -> (i32, i32) {
    %c0_i32 = arith.constant 0 : i32
    %c0_i32_0 = arith.constant 0 : i32
    %c0_i32_1 = arith.constant 0 : i32
    return %c0_i32, %c0_i32_0 : i32, i32
  }
  func.func @transform_3(%arg0: i32) -> (i32, i32) {
    %c0_i32 = arith.constant 0 : i32
    %c0_i32_0 = arith.constant 0 : i32
    %c0_i32_1 = arith.constant 0 : i32
    return %c0_i32, %c0_i32_0 : i32, i32
  }
  func.func @transform_4(%arg0: i32) -> (i32, i32) {
    %c0_i32 = arith.constant 0 : i32
    %c0_i32_0 = arith.constant 0 : i32
    return %arg0, %c0_i32 : i32, i32
  }
}

</mosaic_0001>

<bundles_post_ra>
// kernel: tpu_custom_call.1
= control target key start
LH: loop header
LB: loop body
LE: loop exit
PB: predicated region body
PF: predicated region fallthrough
CT: control target
= control target key end

     0   :  { %9 = vsyncpa [#allocation3], 0  ;;  %s1770_s0 = inlined_call_operand.hbm [shape: f32[1,128], index: 0, kind: input, shape index: {}]   ;;  %s1771_s1 = inlined_call_operand.hbm [shape: bf16[128,512], index: 1, kind: input, shape index: {}]   ;;  %s1772_s2 = inlined_call_operand.hbm [shape: bf16[256,256], index: 2, kind: input, shape index: {}]   ;;  %s1773_s3 = inlined_call_operand.hbm [shape: bf16[512,128], index: 3, kind: input, shape index: {}]   ;;  %s1774_s4 = inlined_call_operand.hbm [shape: bf16[1,128], index: 4, kind: output, shape index: {}]  }
   0x1   :  { %10 = vsyncpa [#allocation6], 0 }
   0x2   :  { %11 = vsyncpa [#allocation9], 0 }
   0x3   :  { %12 = vsyncpa [#allocation4], 0  ;;  %s30_s17 = sshll.u32 %s1771_s1, 4  ;;  %s31_s17 = int_to_ptr.hbm [resolvable:$true] %s30_s17 }
   0x4   :  { %16 = vsyncadd [#allocation3], 112  ;;  %s1627_s18 = smov [#allocation5]   ;;  %s17_s22 = sshll.u32 %s1770_s0, 4  ;;  %s18_s22 = int_to_ptr.hbm [resolvable:$true] %s17_s22 }
   0x5   :  { %s32_s19 = sshll.u32 %s1627_s18, 4  ;;  %s1628_s23 = smov 256   ;;  %s33_s19 = int_to_ptr.vmem [resolvable:$true] %s32_s19 }
   0x6   :  { %s1629_s24 = smov 16   ;;  %s1630_s25 = smov [#allocation2]  }
   0x7   :  { %38 = dma.hbm_to_vmem [thread:$0]  %s31_s17, 4096, %s33_s19, [#allocation6], %s1628_s23, %s1628_s23, %s1629_s24  }
   0x8   :  { %s19_s26 = sshll.u32 %s1630_s25, 4  ;;  %s43_s1 = sshll.u32 %s1772_s2, 4  ;;  %s20_s26 = int_to_ptr.vmem [resolvable:$true] %s19_s26  ;;  %s44_s1 = int_to_ptr.hbm [resolvable:$true] %s43_s1 }
   0x9   :  { %s1631_s29 = smov 1   ;;  %s1632_s30 = smov [#allocation7]  }
   0xa   :  { %25 = dma.hbm_to_vmem [thread:$0]  %s18_s22, 16, %s20_s26, [#allocation3], %s1629_s24, %s1629_s24, %s1631_s29  }
   0xb   :  { %s45_s0 = sshll.u32 %s1632_s30, 4  ;;  %s1633_s5 = smov 128   ;;  %s46_s0 = int_to_ptr.vmem [resolvable:$true] %s45_s0 }
   0xc   :  { %s1634_s6 = smov 8   ;;  %s56_s9 = sshll.u32 %s1773_s3, 4  ;;  %s57_s9 = int_to_ptr.hbm [resolvable:$true] %s56_s9 }
   0xd   :  { %51 = dma.hbm_to_vmem [thread:$0]  %s44_s1, 4096, %s46_s0, [#allocation6], %s1633_s5, %s1633_s5, %s1634_s6  }
   0xe   :  { %s1635_s10 = smov [#allocation8]   ;;  %s1636_s2 = smov 64  }
   0xf   :  { %s58_s11 = sshll.u32 %s1635_s10, 4  ;;  %s1637_s12 = smov 4   ;;  %s59_s11 = int_to_ptr.vmem [resolvable:$true] %s58_s11 }
  0x10   :  { %64 = dma.hbm_to_vmem [thread:$0]  %s57_s9, 4096, %s59_s11, [#allocation9], %s1636_s2, %s1636_s2, %s1637_s12  }
  0x11   :  { %1619 = dma.done.wait [#allocation3], 128  }
  0x12   :  { %1620 = vsyncadd [#allocation3], 4294967168 }
  0x13   :  { %1621 = dma.done.wait [#allocation6], 8192  }
  0x14   :  { %1622 = vsyncadd [#allocation6], 4294959104 }
  0x15   :  { %1623 = dma.done.wait [#allocation9], 4096  }
  0x16   :  { %1624 = vsyncadd [#allocation9], 4294963200  ;;  %v1121_v0 = vld [vmem:[#allocation5 + $0xe0] sm:$0xf]  ;;  %v1421_v1 = vld [vmem:[#allocation5 + $0xec] sm:$0xf0] }
  0x17   :  { %v1419_v2 = vld [vmem:[#allocation5 + $0xe4] sm:$0xf]  ;;  %v1122_v3 = vor.u32 %v1421_v1, %v1121_v0  ;;  %v1123_v4 = vld [vmem:[#allocation5 + $0xf0] sm:$0xf0]  ;;  %v1129_v5 = vld [vmem:[#allocation5 + $0xe8] sm:$0xf] }
  0x18   :  { %v1422_v6 = vld [vmem:[#allocation5 + $0xf4] sm:$0xf0]  ;;  %v1126_v7 = vor.u32 %v1419_v2, %v1123_v4  ;;  %v1420_v9 = vld [vmem:[#allocation5 + $0xec] sm:$0xf]  ;;  %v1131_v10 = vld [vmem:[#allocation5 + $0xf8] sm:$0xf0] }
  0x19   :  { %v1130_v8 = vor.u32 %v1422_v6, %v1129_v5  ;;  %v1105_v11 = vld [vmem:[#allocation5 + $0xc0] sm:$0xf]  ;;  %275 = vmatpush.bf16.msra.mxu0 %v1122_v3  ;;  %v1134_v12 = vor.u32 %v1420_v9, %v1131_v10  ;;  %v1417_v13 = vld [vmem:[#allocation5 + $0xcc] sm:$0xf0]  ;;  %v1415_v14 = vld [vmem:[#allocation5 + $0xc4] sm:$0xf] }
  0x1a   :  { %v1107_v15 = vld [vmem:[#allocation5 + $0xd0] sm:$0xf0]  ;;  %288 = vmatpush.bf16.msra.mxu1 %v1126_v7  ;;  %v1106_v16 = vor.u32 %v1417_v13, %v1105_v11  ;;  %v1113_v18 = vld [vmem:[#allocation5 + $0xc8] sm:$0xf]  ;;  %v1418_v19 = vld [vmem:[#allocation5 + $0xd4] sm:$0xf0] }
  0x1b   :  { %301 = vmatpush.bf16.msra.mxu2 %v1130_v8  ;;  %v1110_v17 = vor.u32 %v1415_v14, %v1107_v15  ;;  %v1416_v20 = vld [vmem:[#allocation5 + $0xcc] sm:$0xf]  ;;  %314 = vmatpush.bf16.msra.mxu3 %v1134_v12  ;;  %v1114_v21 = vor.u32 %v1418_v19, %v1113_v18  ;;  %v1115_v22 = vld [vmem:[#allocation5 + $0xd8] sm:$0xf0]  ;;  %v1089_v23 = vld [vmem:[#allocation5 + $0xa0] sm:$0xf] }
  0x1c   :  { %v1413_v24 = vld [vmem:[#allocation5 + $0xac] sm:$0xf0]  ;;  %v1118_v25 = vor.u32 %v1416_v20, %v1115_v22  ;;  %v1411_v26 = vld [vmem:[#allocation5 + $0xa4] sm:$0xf]  ;;  %v1091_v27 = vld [vmem:[#allocation5 + $0xb0] sm:$0xf0] }
  0x1d   :  { %v1097_v28 = vld [vmem:[#allocation5 + $0xa8] sm:$0xf]  ;;  %276 = vmatpush.bf16.msra.mxu0 %v1106_v16  ;;  %v1090_v29 = vor.u32 %v1413_v24, %v1089_v23  ;;  %v1414_v30 = vld [vmem:[#allocation5 + $0xb4] sm:$0xf0]  ;;  %v1412_v31 = vld [vmem:[#allocation5 + $0xac] sm:$0xf]  ;;  %v1094_v33 = vor.u32 %v1411_v26, %v1091_v27 }
  0x1e   :  { %v1099_v32 = vld [vmem:[#allocation5 + $0xb8] sm:$0xf0]  ;;  %289 = vmatpush.bf16.msra.mxu1 %v1110_v17  ;;  %v1098_v34 = vor.u32 %v1414_v30, %v1097_v28  ;;  %v1073_v35 = vld [vmem:[#allocation5 + $0x80] sm:$0xf]  ;;  %v1409_v36 = vld [vmem:[#allocation5 + $0x8c] sm:$0xf0] }
  0x1f   :  { %302 = vmatpush.bf16.msra.mxu2 %v1114_v21  ;;  %v1407_v37 = vld [vmem:[#allocation5 + $0x84] sm:$0xf]  ;;  %315 = vmatpush.bf16.msra.mxu3 %v1118_v25  ;;  %v1102_v38 = vor.u32 %v1412_v31, %v1099_v32  ;;  %v1075_v39 = vld [vmem:[#allocation5 + $0x90] sm:$0xf0]  ;;  %v1081_v40 = vld [vmem:[#allocation5 + $0x88] sm:$0xf]  ;;  %v1074_v44 = vor.u32 %v1409_v36, %v1073_v35 }
  0x20   :  { %v1410_v41 = vld [vmem:[#allocation5 + $0x94] sm:$0xf0]  ;;  %v1408_v42 = vld [vmem:[#allocation5 + $0x8c] sm:$0xf]  ;;  %v1083_v43 = vld [vmem:[#allocation5 + $0x98] sm:$0xf0]  ;;  %v1078_v45 = vor.u32 %v1407_v37, %v1075_v39 }
  0x21   :  { %277 = vmatpush.bf16.msra.mxu0 %v1090_v29  ;;  %v1082_v46 = vor.u32 %v1410_v41, %v1081_v40  ;;  %v1057_v47 = vld [vmem:[#allocation5 + $0x60] sm:$0xf]  ;;  %v1405_v48 = vld [vmem:[#allocation5 + $0x6c] sm:$0xf0]  ;;  %v1403_v49 = vld [vmem:[#allocation5 + $0x64] sm:$0xf]  ;;  %v1086_v50 = vor.u32 %v1408_v42, %v1083_v43 }
  0x22   :  { %290 = vmatpush.bf16.msra.mxu1 %v1094_v33  ;;  %v1059_v51 = vld [vmem:[#allocation5 + $0x70] sm:$0xf0]  ;;  %v1065_v52 = vld [vmem:[#allocation5 + $0x68] sm:$0xf]  ;;  %v1406_v53 = vld [vmem:[#allocation5 + $0x74] sm:$0xf0]  ;;  %v1058_v56 = vor.u32 %v1405_v48, %v1057_v47 }
  0x23   :  { %303 = vmatpush.bf16.msra.mxu2 %v1098_v34  ;;  %316 = vmatpush.bf16.msra.mxu3 %v1102_v38  ;;  %v1404_v54 = vld [vmem:[#allocation5 + $0x6c] sm:$0xf]  ;;  %v1067_v55 = vld [vmem:[#allocation5 + $0x78] sm:$0xf0]  ;;  %v1062_v57 = vor.u32 %v1403_v49, %v1059_v51  ;;  %v1066_v58 = vor.u32 %v1406_v53, %v1065_v52  ;;  %v1041_v59 = vld [vmem:[#allocation5 + $0x40] sm:$0xf] }
  0x24   :  { %v1401_v60 = vld [vmem:[#allocation5 + $0x4c] sm:$0xf0]  ;;  %v1399_v61 = vld [vmem:[#allocation5 + $0x44] sm:$0xf]  ;;  %v1070_v62 = vor.u32 %v1404_v54, %v1067_v55  ;;  %v1043_v63 = vld [vmem:[#allocation5 + $0x50] sm:$0xf0] }
  0x25   :  { %278 = vmatpush.bf16.msra.mxu0 %v1074_v44  ;;  %v1049_v0 = vld [vmem:[#allocation5 + $0x48] sm:$0xf]  ;;  %v1402_v1 = vld [vmem:[#allocation5 + $0x54] sm:$0xf0]  ;;  %v1400_v2 = vld [vmem:[#allocation5 + $0x4c] sm:$0xf]  ;;  %v1042_v4 = vor.u32 %v1401_v60, %v1041_v59  ;;  %v1046_v5 = vor.u32 %v1399_v61, %v1043_v63 }
  0x26   :  { %291 = vmatpush.bf16.msra.mxu1 %v1078_v45  ;;  %v1051_v3 = vld [vmem:[#allocation5 + $0x58] sm:$0xf0]  ;;  %v1050_v6 = vor.u32 %v1402_v1, %v1049_v0  ;;  %v1025_v7 = vld [vmem:[#allocation5 + $0x20] sm:$0xf]  ;;  %v1397_v8 = vld [vmem:[#allocation5 + $0x2c] sm:$0xf0] }
  0x27   :  { %304 = vmatpush.bf16.msra.mxu2 %v1082_v46  ;;  %317 = vmatpush.bf16.msra.mxu3 %v1086_v50  ;;  %v1395_v9 = vld [vmem:[#allocation5 + $0x24] sm:$0xf]  ;;  %v1054_v10 = vor.u32 %v1400_v2, %v1051_v3  ;;  %v1027_v11 = vld [vmem:[#allocation5 + $0x30] sm:$0xf0]  ;;  %v1033_v12 = vld [vmem:[#allocation5 + $0x28] sm:$0xf]  ;;  %v1026_v16 = vor.u32 %v1397_v8, %v1025_v7 }
  0x28   :  { %v1398_v13 = vld [vmem:[#allocation5 + $0x34] sm:$0xf0]  ;;  %v1396_v14 = vld [vmem:[#allocation5 + $0x2c] sm:$0xf]  ;;  %v1035_v15 = vld [vmem:[#allocation5 + $0x38] sm:$0xf0]  ;;  %v1030_v18 = vor.u32 %v1395_v9, %v1027_v11 }
  0x29   :  { %279 = vmatpush.bf16.msra.mxu0 %v1058_v56  ;;  %v1009_v17 = vld [vmem:[#allocation5] sm:$0xf]  ;;  %v1034_v19 = vor.u32 %v1398_v13, %v1033_v12  ;;  %v1393_v20 = vld [vmem:[#allocation5 + $0xc] sm:$0xf0]  ;;  %v1391_v21 = vld [vmem:[#allocation5 + $0x4] sm:$0xf]  ;;  %v1038_v23 = vor.u32 %v1396_v14, %v1035_v15 }
  0x2a   :  { %292 = vmatpush.bf16.msra.mxu1 %v1062_v57  ;;  %v1011_v22 = vld [vmem:[#allocation5 + $0x10] sm:$0xf0]  ;;  %v1017_v24 = vld [vmem:[#allocation5 + $0x8] sm:$0xf]  ;;  %v1394_v25 = vld [vmem:[#allocation5 + $0x14] sm:$0xf0]  ;;  %v1010_v30 = vor.u32 %v1393_v20, %v1009_v17 }
  0x2b   :  { %305 = vmatpush.bf16.msra.mxu2 %v1066_v58  ;;  %318 = vmatpush.bf16.msra.mxu3 %v1070_v62  ;;  %v1392_v26 = vld [vmem:[#allocation5 + $0xc] sm:$0xf]  ;;  %v1019_v27 = vld [vmem:[#allocation5 + $0x18] sm:$0xf0]  ;;  %v1193_v28 = vld [vmem:[#allocation7 + $0x70] sm:$0xf]  ;;  %v1014_v34 = vor.u32 %v1391_v21, %v1011_v22  ;;  %v1018_v35 = vor.u32 %v1394_v25, %v1017_v24 }
  0x2c   :  { %v1438_v29 = vld [vmem:[#allocation7 + $0x74] sm:$0xf0]  ;;  %v1257_v32 = vld [vmem:[#allocation7 + $0xf0] sm:$0xf]  ;;  %v1022_v36 = vor.u32 %v1392_v26, %v1019_v27  ;;  %v1437_v38 = vld [vmem:[#allocation7 + $0x74] sm:$0xf] }
  0x2d   :  { %280 = vmatpush.bf16.msra.mxu0 %v1042_v4  ;;  %v81_v31 = vld [vmem:[#allocation2] sm:$0xff]  ;;  %v1680_v37 = vor.u32 %v1438_v29, %v1193_v28  ;;  %v1453_v40 = vld [vmem:[#allocation7 + $0xf4] sm:$0xf]  ;;  %v1185_v44 = vld [vmem:[#allocation7 + $0x60] sm:$0xf]  ;;  %vm962_vm0 = vcmask 1040384  }
  0x2e   :  { %293 = vmatpush.bf16.msra.mxu1 %v1046_v5  ;;  %v1454_v33 = vld [vmem:[#allocation7 + $0xf4] sm:$0xf0]  ;;  %v1195_v39 = vld [vmem:[#allocation7 + $0x78] sm:$0xf0]  ;;  %v82_v41 = vpack.c.bf16 %v81_v31, %v81_v31  ;;  %v1436_v45 = vld [vmem:[#allocation7 + $0x64] sm:$0xf0] }
  0x2f   :  { %306 = vmatpush.bf16.msra.mxu2 %v1050_v6  ;;  %319 = vmatpush.bf16.msra.mxu3 %v1054_v10  ;;  %v1682_v42 = vor.u32 %v1454_v33, %v1257_v32  ;;  %v1259_v43 = vld [vmem:[#allocation7 + $0xf8] sm:$0xf0]  ;;  %v1249_v46 = vld [vmem:[#allocation7 + $0xe0] sm:$0xf]  ;;  %v1452_v47 = vld [vmem:[#allocation7 + $0xe4] sm:$0xf0]  ;;  %v1684_v48 = vor.u32 %v1437_v38, %v1195_v39  ;;  %v1689_v50 = vor.u32 %v1436_v45, %v1185_v44 }
  0x30   :  { %v1687_v49 = vor.u32 %v1453_v40, %v1259_v43  ;;  %v1435_v51 = vld [vmem:[#allocation7 + $0x64] sm:$0xf]  ;;  %v1187_v52 = vld [vmem:[#allocation7 + $0x68] sm:$0xf0]  ;;  %v1692_v54 = vor.u32 %v1452_v47, %v1249_v46  ;;  %v1177_v56 = vld [vmem:[#allocation7 + $0x50] sm:$0xf] }
  0x31   :  { %281 = vmatpush.bf16.msra.mxu0 %v1026_v16  ;;  %v1451_v53 = vld [vmem:[#allocation7 + $0xe4] sm:$0xf]  ;;  %v1251_v55 = vld [vmem:[#allocation7 + $0xe8] sm:$0xf0]  ;;  %v1434_v57 = vld [vmem:[#allocation7 + $0x54] sm:$0xf0]  ;;  %v1695_v60 = vor.u32 %v1435_v51, %v1187_v52 }
  0x32   :  { %294 = vmatpush.bf16.msra.mxu1 %v1030_v18  ;;  %v1241_v58 = vld [vmem:[#allocation7 + $0xd0] sm:$0xf]  ;;  %v1450_v59 = vld [vmem:[#allocation7 + $0xd4] sm:$0xf0]  ;;  %v1699_v61 = vor.u32 %v1451_v53, %v1251_v55  ;;  %v1701_v62 = vor.u32 %v1434_v57, %v1177_v56  ;;  %v1433_v63 = vld [vmem:[#allocation7 + $0x54] sm:$0xf] }
  0x33   :  { %307 = vmatpush.bf16.msra.mxu2 %v1034_v19  ;;  %320 = vmatpush.bf16.msra.mxu3 %v1038_v23  ;;  %v1179_v0 = vld [vmem:[#allocation7 + $0x58] sm:$0xf0]  ;;  %v1449_v1 = vld [vmem:[#allocation7 + $0xd4] sm:$0xf]  ;;  %v1704_v2 = vor.u32 %v1450_v59, %v1241_v58  ;;  %v1169_v4 = vld [vmem:[#allocation7 + $0x40] sm:$0xf] }
  0x34   :  { %v1243_v3 = vld [vmem:[#allocation7 + $0xd8] sm:$0xf0]  ;;  %v1432_v5 = vld [vmem:[#allocation7 + $0x44] sm:$0xf0]  ;;  %v1233_v6 = vld [vmem:[#allocation7 + $0xc0] sm:$0xf]  ;;  %v1707_v8 = vor.u32 %v1433_v63, %v1179_v0 }
  0x35   :  { %282 = vmatpush.bf16.msra.mxu0 %v1010_v30  ;;  %v1448_v7 = vld [vmem:[#allocation7 + $0xc4] sm:$0xf0]  ;;  %v1711_v9 = vor.u32 %v1449_v1, %v1243_v3  ;;  %v1713_v10 = vor.u32 %v1432_v5, %v1169_v4  ;;  %v1431_v11 = vld [vmem:[#allocation7 + $0x44] sm:$0xf]  ;;  %v1171_v12 = vld [vmem:[#allocation7 + $0x48] sm:$0xf0] }
  0x36   :  { %295 = vmatpush.bf16.msra.mxu1 %v1014_v34  ;;  %v1447_v13 = vld [vmem:[#allocation7 + $0xc4] sm:$0xf]  ;;  %v1716_v14 = vor.u32 %v1448_v7, %v1233_v6  ;;  %v1235_v15 = vld [vmem:[#allocation7 + $0xc8] sm:$0xf0]  ;;  %v1161_v16 = vld [vmem:[#allocation7 + $0x30] sm:$0xf]  ;;  %v1719_v20 = vor.u32 %v1431_v11, %v1171_v12 }
  0x37   :  { %308 = vmatpush.bf16.msra.mxu2 %v1018_v35  ;;  %321 = vmatpush.bf16.msra.mxu3 %v1022_v36  ;;  %v1430_v17 = vld [vmem:[#allocation7 + $0x34] sm:$0xf0]  ;;  %v1225_v18 = vld [vmem:[#allocation7 + $0xb0] sm:$0xf]  ;;  %v1723_v21 = vor.u32 %v1447_v13, %v1235_v15  ;;  %v1429_v23 = vld [vmem:[#allocation7 + $0x34] sm:$0xf] }
  0x38   :  { %283 = vmatmul.bf16.vlgmr.msra.gmra.mxu0 %v82_v41  ;;  %v1446_v19 = vld [vmem:[#allocation7 + $0xb4] sm:$0xf0]  ;;  %v1725_v22 = vor.u32 %v1430_v17, %v1161_v16  ;;  %v1163_v24 = vld [vmem:[#allocation7 + $0x38] sm:$0xf0]  ;;  %v1445_v25 = vld [vmem:[#allocation7 + $0xb4] sm:$0xf] }
  0x39   :  { %532 = vmatpush.bf16.msrb.mxu0 %v1680_v37  ;;  %296 = vmatmul.bf16.vlgmr.msra.gmra.mxu1 %v82_v41  ;;  %v1728_v26 = vor.u32 %v1446_v19, %v1225_v18  ;;  %v1227_v27 = vld [vmem:[#allocation7 + $0xb8] sm:$0xf0]  ;;  %v1153_v28 = vld [vmem:[#allocation7 + $0x20] sm:$0xf]  ;;  %v1428_v29 = vld [vmem:[#allocation7 + $0x24] sm:$0xf0]  ;;  %v1731_v32 = vor.u32 %v1429_v23, %v1163_v24 }
  0x3a   :  { %545 = vmatpush.bf16.msrb.mxu1 %v1682_v42  ;;  %309 = vmatmul.bf16.vlgmr.msra.gmra.mxu2 %v82_v41  ;;  %v1217_v30 = vld [vmem:[#allocation7 + $0xa0] sm:$0xf]  ;;  %v1444_v31 = vld [vmem:[#allocation7 + $0xa4] sm:$0xf0]  ;;  %v1735_v33 = vor.u32 %v1445_v25, %v1227_v27  ;;  %v1737_v34 = vor.u32 %v1428_v29, %v1153_v28  ;;  %v1427_v35 = vld [vmem:[#allocation7 + $0x24] sm:$0xf] }
  0x3b   :  { %322 = vmatmul.bf16.vlgmr.msra.gmra.mxu3 %v82_v41  ;;  %558 = vmatpush.bf16.msrb.mxu2 %v1684_v48  ;;  %v1155_v36 = vld [vmem:[#allocation7 + $0x28] sm:$0xf0]  ;;  %v1443_v38 = vld [vmem:[#allocation7 + $0xa4] sm:$0xf]  ;;  %v1218_v39 = vor.u32 %v1444_v31, %v1217_v30  ;;  %v1145_v41 = vld [vmem:[#allocation7 + $0x10] sm:$0xf] }
  0x3c   :  { %571 = vmatpush.bf16.msrb.mxu3 %v1687_v49  ;;  %v1219_v40 = vld [vmem:[#allocation7 + $0xa8] sm:$0xf0]  ;;  %v1426_v43 = vld [vmem:[#allocation7 + $0x14] sm:$0xf0]  ;;  %v1209_v44 = vld [vmem:[#allocation7 + $0x90] sm:$0xf]  ;;  %v1158_v46 = vor.u32 %v1427_v35, %v1155_v36 }
  0x3d   :  { %533 = vmatpush.bf16.msrb.mxu0 %v1689_v50  ;;  %v1442_v45 = vld [vmem:[#allocation7 + $0x94] sm:$0xf0]  ;;  %v1222_v47 = vor.u32 %v1443_v38, %v1219_v40  ;;  %v1146_v51 = vor.u32 %v1426_v43, %v1145_v41  ;;  %v1425_v52 = vld [vmem:[#allocation7 + $0x14] sm:$0xf]  ;;  %v1147_v53 = vld [vmem:[#allocation7 + $0x18] sm:$0xf0] }
  0x3e   :  { %546 = vmatpush.bf16.msrb.mxu1 %v1692_v54  ;;  %v1441_v55 = vld [vmem:[#allocation7 + $0x94] sm:$0xf]  ;;  %v1210_v56 = vor.u32 %v1442_v45, %v1209_v44  ;;  %v1211_v57 = vld [vmem:[#allocation7 + $0x98] sm:$0xf0]  ;;  %v1137_v58 = vld [vmem:[#allocation7] sm:$0xf]  ;;  %v1150_v1 = vor.u32 %v1425_v52, %v1147_v53 }
  0x3f   :  { %559 = vmatpush.bf16.msrb.mxu2 %v1695_v60  ;;  %v1424_v59 = vld [vmem:[#allocation7 + $0x4] sm:$0xf0]  ;;  %v1201_v63 = vld [vmem:[#allocation7 + $0x80] sm:$0xf]  ;;  %v1214_v3 = vor.u32 %v1441_v55, %v1211_v57  ;;  %v1423_v5 = vld [vmem:[#allocation7 + $0x4] sm:$0xf] }
  0x40   :  { %572 = vmatpush.bf16.msrb.mxu3 %v1699_v61  ;;  %v1440_v0 = vld [vmem:[#allocation7 + $0x84] sm:$0xf0]  ;;  %v1138_v4 = vor.u32 %v1424_v59, %v1137_v58  ;;  %v1139_v6 = vld [vmem:[#allocation7 + $0x8] sm:$0xf0]  ;;  %v1439_v11 = vld [vmem:[#allocation7 + $0x84] sm:$0xf] }
  0x41   :  { %534 = vmatpush.bf16.msrb.mxu0 %v1701_v62  ;;  %v1202_v7 = vor.u32 %v1440_v0, %v1201_v63  ;;  %v1203_v12 = vld [vmem:[#allocation7 + $0x88] sm:$0xf0]  ;;  %v1142_v13 = vor.u32 %v1423_v5, %v1139_v6  ;;  %v1478_v17 = vld [vmem:[#allocation8 + $0xb8] sm:$0xff]  ;;  %v1477_v23 = vld [vmem:[#allocation8 + $0xb0] sm:$0xff]  ;;  %vm966_vm1 = vcmask 1041409   ;;  %vm970_vm2 = vcmask 1042434  }
  0x42   :  { %547 = vmatpush.bf16.msrb.mxu1 %v1704_v2  ;;  %v1206_v15 = vor.u32 %v1439_v11, %v1203_v12  ;;  %v1486_v18 = vld [vmem:[#allocation8 + $0xf8] sm:$0xff]  ;;  %v1460_v27 = vld [vmem:[#allocation8 + $0x28] sm:$0xff]  ;;  %v1459_v31 = vld [vmem:[#allocation8 + $0x20] sm:$0xff]  ;;  %vm974_vm3 = vcmask 1043459  }
  0x43   :  { %560 = vmatpush.bf16.msrb.mxu2 %v1707_v8  ;;  %v1468_v28 = vld [vmem:[#allocation8 + $0x68] sm:$0xff]  ;;  %v1458_v35 = vld [vmem:[#allocation8 + $0x18] sm:$0xff]  ;;  %v1457_v38 = vld [vmem:[#allocation8 + $0x10] sm:$0xff] }
  0x44   :  { %573 = vmatpush.bf16.msrb.mxu3 %v1711_v9  ;;  %v1466_v36 = vld [vmem:[#allocation8 + $0x58] sm:$0xff]  ;;  %v1476_v40 = vld [vmem:[#allocation8 + $0xa8] sm:$0xff]  ;;  %v1465_v41 = vld [vmem:[#allocation8 + $0x50] sm:$0xff] }
  0x45   :  { %535 = vmatpush.bf16.msrb.mxu0 %v1713_v10  ;;  %v1485_v43 = vld [vmem:[#allocation8 + $0xf0] sm:$0xff]  ;;  %v1455_v44 = vld [vmem:[#allocation8] sm:$0xff]  ;;  %v1472_v57 = vld [vmem:[#allocation8 + $0x88] sm:$0xff] }
  0x46   :  { %548 = vmatpush.bf16.msrb.mxu1 %v1716_v14  ;;  %v1475_v45 = vld [vmem:[#allocation8 + $0xa0] sm:$0xff]  ;;  %v1473_v55 = vld [vmem:[#allocation8 + $0x90] sm:$0xff]  ;;  %v1480_v63 = vld [vmem:[#allocation8 + $0xc8] sm:$0xff] }
  0x47   :  { %561 = vmatpush.bf16.msrb.mxu2 %v1719_v20  ;;  %v1463_v52 = vld [vmem:[#allocation8 + $0x40] sm:$0xff]  ;;  %v1481_v58 = vld [vmem:[#allocation8 + $0xd0] sm:$0xff] }
  0x48   :  { %574 = vmatpush.bf16.msrb.mxu3 %v1723_v21  ;;  %v1483_v53 = vld [vmem:[#allocation8 + $0xe0] sm:$0xff] }
  0x49   :  { %536 = vmatpush.bf16.msrb.mxu0 %v1725_v22  ;;  %v1471_v59 = vld [vmem:[#allocation8 + $0x80] sm:$0xff] }
  0x4a   :  { %549 = vmatpush.bf16.msrb.mxu1 %v1728_v26  ;;  %v1479_v0 = vld [vmem:[#allocation8 + $0xc0] sm:$0xff] }
  0x4b   :  { %562 = vmatpush.bf16.msrb.mxu2 %v1731_v32 }
  0x4c   :  { %575 = vmatpush.bf16.msrb.mxu3 %v1735_v33 }
  0x4d   :  { %537 = vmatpush.bf16.msrb.mxu0 %v1737_v34 }
  0x4e   :  { %550 = vmatpush.bf16.msrb.mxu1 %v1218_v39 }
  0x4f   :  { %563 = vmatpush.bf16.msrb.mxu2 %v1158_v46 }
  0x50   :  { %576 = vmatpush.bf16.msrb.mxu3 %v1222_v47 }
  0x51   :  { %538 = vmatpush.bf16.msrb.mxu0 %v1146_v51 }
  0x52   :  { %551 = vmatpush.bf16.msrb.mxu1 %v1210_v56 }
  0x53   :  { %564 = vmatpush.bf16.msrb.mxu2 %v1150_v1 }
  0x54   :  { %577 = vmatpush.bf16.msrb.mxu3 %v1214_v3 }
  0x55   :  { %539 = vmatpush.bf16.msrb.mxu0 %v1138_v4 }
  0x56   :  { %552 = vmatpush.bf16.msrb.mxu1 %v1202_v7 }
  0x57   :  { %565 = vmatpush.bf16.msrb.mxu2 %v1142_v13 }
  0x58   :  { %578 = vmatpush.bf16.msrb.mxu3 %v1206_v15 }
  0x59   :  { %591 = vmatpush.bf16.msra.mxu0 %v1680_v37 }
  0x5a   :  { %604 = vmatpush.bf16.msra.mxu1 %v1682_v42 }
  0x5b   :  { %617 = vmatpush.bf16.msra.mxu2 %v1684_v48 }
  0x5c   :  { %630 = vmatpush.bf16.msra.mxu3 %v1687_v49 }
  0x5d   :  { %592 = vmatpush.bf16.msra.mxu0 %v1689_v50 }
  0x5e   :  { %605 = vmatpush.bf16.msra.mxu1 %v1692_v54 }
  0x5f   :  { %618 = vmatpush.bf16.msra.mxu2 %v1695_v60 }
  0x60   :  { %631 = vmatpush.bf16.msra.mxu3 %v1699_v61 }
  0x61   :  { %593 = vmatpush.bf16.msra.mxu0 %v1701_v62 }
  0x62   :  { %606 = vmatpush.bf16.msra.mxu1 %v1704_v2 }
  0x63   :  { %619 = vmatpush.bf16.msra.mxu2 %v1707_v8 }
  0x64   :  { %632 = vmatpush.bf16.msra.mxu3 %v1711_v9 }
  0x65   :  { %594 = vmatpush.bf16.msra.mxu0 %v1713_v10  ;;  %v1462_v10 = vld [vmem:[#allocation8 + $0x38] sm:$0xff] }
  0x66   :  { %607 = vmatpush.bf16.msra.mxu1 %v1716_v14  ;;  %v1470_v14 = vld [vmem:[#allocation8 + $0x78] sm:$0xff] }
  0x67   :  { %620 = vmatpush.bf16.msra.mxu2 %v1719_v20 }
  0x68   :  { %633 = vmatpush.bf16.msra.mxu3 %v1723_v21  ;;  %v1461_v21 = vld [vmem:[#allocation8 + $0x30] sm:$0xff] }
  0x69   :  { %595 = vmatpush.bf16.msra.mxu0 %v1725_v22  ;;  %v1469_v22 = vld [vmem:[#allocation8 + $0x70] sm:$0xff] }
  0x6a   :  { %608 = vmatpush.bf16.msra.mxu1 %v1728_v26 }
  0x6b   :  { %621 = vmatpush.bf16.msra.mxu2 %v1731_v32  ;;  %v1467_v32 = vld [vmem:[#allocation8 + $0x60] sm:$0xff] }
  0x6c   :  { %634 = vmatpush.bf16.msra.mxu3 %v1735_v33 }
  0x6d   :  { %596 = vmatpush.bf16.msra.mxu0 %v1737_v34 }
  0x6e   :  { %609 = vmatpush.bf16.msra.mxu1 %v1218_v39  ;;  %v1456_v39 = vld [vmem:[#allocation8 + $0x8] sm:$0xff] }
  0x6f   :  { %622 = vmatpush.bf16.msra.mxu2 %v1158_v46  ;;  %v1464_v46 = vld [vmem:[#allocation8 + $0x48] sm:$0xff] }
  0x70   :  { %635 = vmatpush.bf16.msra.mxu3 %v1222_v47  ;;  %v1484_v47 = vld [vmem:[#allocation8 + $0xe8] sm:$0xff] }
  0x71   :  { %597 = vmatpush.bf16.msra.mxu0 %v1146_v51  ;;  %v1474_v51 = vld [vmem:[#allocation8 + $0x98] sm:$0xff] }
  0x72   :  { %610 = vmatpush.bf16.msra.mxu1 %v1210_v56  ;;  %v1482_v56 = vld [vmem:[#allocation8 + $0xd8] sm:$0xff] }
  0x73   :  { %623 = vmatpush.bf16.msra.mxu2 %v1150_v1 }
  0x74   :  { %636 = vmatpush.bf16.msra.mxu3 %v1214_v3 }
  0x75   :  { %598 = vmatpush.bf16.msra.mxu0 %v1138_v4 }
  0x76   :  { %611 = vmatpush.bf16.msra.mxu1 %v1202_v7 }
  0x77   :  { %624 = vmatpush.bf16.msra.mxu2 %v1142_v13 }
  0x78   :  { %637 = vmatpush.bf16.msra.mxu3 %v1206_v15 }
  0xb5   :  { %v284_v37 = vpop.f32.mrf.mxu0 }
  0xb6   :  { %v327_v42 = vmax.f32 %v284_v37, 0.0  ;;  %v297_v48 = vpop.f32.mrf.mxu1 }
  0xb7   :  { %v328_v49 = vmax.f32 %v297_v48, 0.0 }
  0xb9   :  { %v331_v50 = vpack.c.bf16 %v328_v49, %v327_v42 }
  0xbb   :  { %v366_v54 = vunpack.c.l.b16 %v331_v50  ;;  %v367_v60 = vunpack.c.h.b16 %v331_v50 }
  0xbd   :  { %v310_v61 = vpop.f32.mrf.mxu2  ;;  %v286_v62 = vpop.f32.mrf.mxu0  ;;  %v368_v8 = vpack.c.b16 %v366_v54, %v366_v54  ;;  %v369_v9 = vpack.c.b16 %v367_v60, %v367_v60 }
  0xbe   :  { %v323_v2 = vpop.f32.mrf.mxu3  ;;  %v299_v16 = vpop.f32.mrf.mxu1  ;;  %v329_v19 = vmax.f32 %v310_v61, 0.0 }
  0xbf   :  { %v330_v20 = vmax.f32 %v323_v2, 0.0  ;;  %540 = vmatmul.bf16.vlgmr.msrb.gmra.mxu0 %v368_v8  ;;  %553 = vmatmul.bf16.vlgmr.msrb.gmra.mxu1 %v369_v9 }
  0xc0   :  { %566 = vmatmul.bf16.vlgmr.msrb.gmra.mxu2 %v368_v8  ;;  %579 = vmatmul.bf16.vlgmr.msrb.gmra.mxu3 %v369_v9 }
  0xc1   :  { %907 = vmatpush.bf16.msrb.mxu0 %v1462_v10  ;;  %920 = vmatpush.bf16.msrb.mxu1 %v1470_v14  ;;  %v332_v24 = vpack.c.bf16 %v330_v20, %v329_v19 }
  0xc2   :  { %933 = vmatpush.bf16.msrb.mxu2 %v1478_v17  ;;  %946 = vmatpush.bf16.msrb.mxu3 %v1486_v18 }
  0xc3   :  { %v585_v29 = vunpack.c.l.b16 %v332_v24  ;;  %v586_v30 = vunpack.c.h.b16 %v332_v24 }
  0xc5   :  { %v312_v25 = vpop.f32.mrf.mxu2  ;;  %908 = vmatpush.bf16.msrb.mxu0 %v1461_v21  ;;  %921 = vmatpush.bf16.msrb.mxu1 %v1469_v22  ;;  %v587_v33 = vpack.c.b16 %v585_v29, %v585_v29  ;;  %v588_v34 = vpack.c.b16 %v586_v30, %v586_v30 }
  0xc6   :  { %v325_v26 = vpop.f32.mrf.mxu3  ;;  %934 = vmatpush.bf16.msrb.mxu2 %v1477_v23  ;;  %947 = vmatpush.bf16.msrb.mxu3 %v1485_v43 }
  0xc9   :  { %909 = vmatpush.bf16.msrb.mxu0 %v1460_v27  ;;  %922 = vmatpush.bf16.msrb.mxu1 %v1468_v28 }
  0xca   :  { %935 = vmatpush.bf16.msrb.mxu2 %v1476_v40  ;;  %948 = vmatpush.bf16.msrb.mxu3 %v1484_v47 }
  0xcd   :  { %910 = vmatpush.bf16.msrb.mxu0 %v1459_v31  ;;  %923 = vmatpush.bf16.msrb.mxu1 %v1467_v32 }
  0xce   :  { %936 = vmatpush.bf16.msrb.mxu2 %v1475_v45  ;;  %949 = vmatpush.bf16.msrb.mxu3 %v1483_v53 }
  0xcf   :  { %599 = vmatmul.bf16.vlgmr.msra.gmra.mxu0 %v587_v33  ;;  %612 = vmatmul.bf16.vlgmr.msra.gmra.mxu1 %v588_v34 }
  0xd0   :  { %625 = vmatmul.bf16.vlgmr.msra.gmra.mxu2 %v587_v33  ;;  %638 = vmatmul.bf16.vlgmr.msra.gmra.mxu3 %v588_v34 }
  0xd1   :  { %911 = vmatpush.bf16.msrb.mxu0 %v1458_v35  ;;  %924 = vmatpush.bf16.msrb.mxu1 %v1466_v36 }
  0xd2   :  { %937 = vmatpush.bf16.msrb.mxu2 %v1474_v51  ;;  %950 = vmatpush.bf16.msrb.mxu3 %v1482_v56 }
  0xd5   :  { %912 = vmatpush.bf16.msrb.mxu0 %v1457_v38  ;;  %925 = vmatpush.bf16.msrb.mxu1 %v1465_v41 }
  0xd6   :  { %938 = vmatpush.bf16.msrb.mxu2 %v1473_v55  ;;  %951 = vmatpush.bf16.msrb.mxu3 %v1481_v58 }
  0xd9   :  { %913 = vmatpush.bf16.msrb.mxu0 %v1456_v39  ;;  %926 = vmatpush.bf16.msrb.mxu1 %v1464_v46 }
  0xda   :  { %939 = vmatpush.bf16.msrb.mxu2 %v1472_v57  ;;  %952 = vmatpush.bf16.msrb.mxu3 %v1480_v63 }
  0xdd   :  { %914 = vmatpush.bf16.msrb.mxu0 %v1455_v44  ;;  %927 = vmatpush.bf16.msrb.mxu1 %v1463_v52 }
  0xde   :  { %940 = vmatpush.bf16.msrb.mxu2 %v1471_v59  ;;  %953 = vmatpush.bf16.msrb.mxu3 %v1479_v0 }
 0x13c   :  { %v541_v1 = vpop.f32.mrf.mxu0  ;;  %v554_v3 = vpop.f32.mrf.mxu1 }
 0x13d   :  { %v555_v4 = vadd.f32 %v554_v3, %v541_v1 }
 0x13f   :  { %v643_v5 = vmax.f32 %v555_v4, 0.0 }
 0x141   :  { %v647_v6 = vpack.c.bf16 %v643_v5, %v643_v5 }
 0x143   :  { %v567_v7 = vpop.f32.mrf.mxu2  ;;  %v580_v11 = vpop.f32.mrf.mxu3  ;;  %915 = vmatmul.bf16.vlgmr.msrb.gmra.mxu0 %v647_v6 }
 0x144   :  { %v581_v12 = vadd.f32 %v580_v11, %v567_v7  ;;  %v543_v13 = vpop.f32.mrf.mxu0  ;;  %v556_v15 = vpop.f32.mrf.mxu1 }
 0x146   :  { %v644_v37 = vmax.f32 %v581_v12, 0.0 }
 0x148   :  { %v648_v42 = vpack.c.bf16 %v644_v37, %v644_v37 }
 0x14a   :  { %928 = vmatmul.bf16.vlgmr.msrb.gmra.mxu1 %v648_v42 }
 0x14b   :  { %v569_v48 = vpop.f32.mrf.mxu2  ;;  %v582_v49 = vpop.f32.mrf.mxu3 }
 0x14c   :  { %v600_v50 = vpop.f32.mrf.mxu0  ;;  %v613_v54 = vpop.f32.mrf.mxu1 }
 0x14d   :  { %v614_v60 = vadd.f32 %v613_v54, %v600_v50 }
 0x14f   :  { %v645_v61 = vmax.f32 %v614_v60, 0.0 }
 0x151   :  { %v649_v62 = vpack.c.bf16 %v645_v61, %v645_v61 }
 0x153   :  { %v626_v2 = vpop.f32.mrf.mxu2  ;;  %v639_v8 = vpop.f32.mrf.mxu3  ;;  %941 = vmatmul.bf16.vlgmr.msrb.gmra.mxu2 %v649_v62 }
 0x154   :  { %v640_v9 = vadd.f32 %v639_v8, %v626_v2  ;;  %v602_v10 = vpop.f32.mrf.mxu0  ;;  %v615_v14 = vpop.f32.mrf.mxu1 }
 0x156   :  { %v646_v16 = vmax.f32 %v640_v9, 0.0 }
 0x158   :  { %v650_v17 = vpack.c.bf16 %v646_v16, %v646_v16 }
 0x15a   :  { %954 = vmatmul.bf16.vlgmr.msrb.gmra.mxu3 %v650_v17 }
 0x15b   :  { %v628_v18 = vpop.f32.mrf.mxu2  ;;  %v641_v19 = vpop.f32.mrf.mxu3 }
 0x1c0   :  { %v916_v20 = vpop.f32.mrf.mxu0 }
 0x1c7   :  { %v929_v21 = vpop.f32.mrf.mxu1 }
 0x1c8   :  { %v918_v22 = vpop.f32.mrf.mxu0  ;;  %v930_v25 = vadd.f32 %v929_v21, %v916_v20 }
 0x1cf   :  { %v931_v23 = vpop.f32.mrf.mxu1 }
 0x1d6   :  { %v942_v24 = vpop.f32.mrf.mxu2 }
 0x1d7   :  { %v943_v26 = vadd.f32 %v942_v24, %v930_v25 }
 0x1dd   :  { %v955_v27 = vpop.f32.mrf.mxu3 }
 0x1de   :  { %v956_v28 = vadd.f32 %v955_v27, %v943_v26  ;;  %v944_v29 = vpop.f32.mrf.mxu2 }
 0x1e0   :  { %v959_v30 = vpack.c.bf16 %v956_v28, %v956_v28 }
 0x1e2   :  { %v961_v31 = vrot.slane %v959_v30, 3 }
 0x1e4   :  { %v965_v32 = vsel %vm962_vm0, %v959_v30, %v961_v31  ;;  %v967_v33 = vsel %vm966_vm1, %v959_v30, %v961_v31  ;;  %v971_v34 = vsel %vm970_vm2, %v959_v30, %v961_v31  ;;  %v975_v35 = vsel %vm974_vm3, %v959_v30, %v961_v31 }
 0x1e5   :  { %v969_v36 = vrot.slane %v967_v33, 1  ;;  %v973_v38 = vrot.slane %v971_v34, 2  ;;  %v977_v39 = vrot.slane %v975_v35, 3  ;;  %982 = vst [vmem:[#allocation10] sm:$0x1] %v965_v32  ;;  %v957_v40 = vpop.f32.mrf.mxu3 }
 0x1e7   :  { %983 = vst [vmem:[#allocation10 + $0x1] sm:$0x1] %v969_v36 }
 0x1e8   :  { %984 = vst [vmem:[#allocation10 + $0x2] sm:$0x1] %v973_v38 }
 0x1e9   :  { %985 = vst [vmem:[#allocation10 + $0x3] sm:$0x1] %v977_v39 }
 0x1ea   :  { %989 = vsyncadd [#allocation4], 48  ;;  %s992_s14 = sshll.u32 %s1774_s4, 4  ;;  %s1638_s15 = smov [#allocation10]   ;;  %s993_s14 = int_to_ptr.hbm [resolvable:$true] %s992_s14 }
 0x1eb   :  { %s990_s16 = sshll.u32 %s1638_s15, 4  ;;  %s991_s16 = int_to_ptr.vmem [resolvable:$true] %s990_s16 }
 0x1ec   :  { %998 = dma.vmem_to_hbm [thread:$0]  %s991_s16, 16, %s993_s14, [#allocation4], %s1629_s24, %s1629_s24, %s1631_s29  }
 0x1ed   :  { %1625 = dma.done.wait [#allocation4], 64  }
 0x1ee   :  { %1626 = vsyncadd [#allocation4], 4294967232 }
 0x1ef   :  { %1003 = vsyncpa [#allocation3], 1 }
 0x1f0   :  { %1004 = vsyncpa [#allocation6], 1 }
 0x1f1   :  { %1005 = vsyncpa [#allocation9], 1 }
 0x1f2   :  { %1006 = vsyncpa [#allocation4], 1 }

</bundles_post_ra>
